<compile_context>
chip_gen: v5e
topology: v5e:2x2
jax: 0.10.0
libtpu: 0.0.40
codegen_flags: <defaults>
</compile_context>

<pallas_src>
import jax
import jax.numpy as jnp
from jax.experimental import pallas as pl
from jax.experimental.pallas import tpu as pltpu

_LANES = 512          # lane-dense width: large multiple of 128
_MAX_TILE_ROWS = 512  # 512*512*4 B = 1 MiB per f32 tile; 3 arrays x 2 buffers ~ 6 MiB


def _noise_apply_kernel(x_ref, noise_ref, o_ref):
    # noise_ref already holds sigma * N(0, 1); pure VPU elementwise in the input dtype.
    x = x_ref[...]
    o_ref[...] = x + x * noise_ref[...]


def noise_layer(x, seed, *, sigma=0.1, training=True):
    """Pallas equivalent of NoiseLayer.forward.

    Args:
      x: array of any shape (e.g. NCHW feature map).
      seed: int seed for the noise draw (replaces torch's global RNG).
      sigma: relative noise std.
      training: mirrors nn.Module.training; identity when False.
    """
    if (not training) or sigma == 0.0:
        return x

    orig_shape = x.shape
    total = x.size

    # Sigma-scaled standard-normal noise, generated in x.dtype; the scalar multiply
    # fuses into the XLA RNG kernel, so this is a single HBM write of `total` elements.
    key = jax.random.PRNGKey(seed)
    noise = jax.random.normal(key, (total,), dtype=x.dtype) * jnp.asarray(sigma, x.dtype)

    # Flatten to a lane-dense (rows, _LANES) slab; pad the tail so the block shape is
    # either the full array or an (8,128)-divisible tile.
    rows = -(-total // _LANES)
    if rows > _MAX_TILE_ROWS:
        tile_rows = _MAX_TILE_ROWS
        rows = -(-rows // tile_rows) * tile_rows
    else:
        tile_rows = rows
    padded = rows * _LANES

    x_flat = x.reshape(total)
    if padded != total:
        x_flat = jnp.pad(x_flat, (0, padded - total))
        noise = jnp.pad(noise, (0, padded - total))
    x2 = x_flat.reshape(rows, _LANES)
    n2 = noise.reshape(rows, _LANES)

    grid = (rows // tile_rows,)
    block = pl.BlockSpec((tile_rows, _LANES), lambda i: (i, 0))

    out2 = pl.pallas_call(
        _noise_apply_kernel,
        out_shape=jax.ShapeDtypeStruct((rows, _LANES), x.dtype),
        grid_spec=pltpu.PrefetchScalarGridSpec(
            num_scalar_prefetch=0,
            grid=grid,
            in_specs=[block, block],
            out_specs=pl.BlockSpec((tile_rows, _LANES), lambda i: (i, 0)),
        ),
        compiler_params=pltpu.CompilerParams(
            dimension_semantics=("parallel",),
            vmem_limit_bytes=32 * 1024 * 1024,
        ),
    )(x2, n2)

    return out2.reshape(padded)[:total].reshape(orig_shape)


if __name__ == "__main__":
    key = jax.random.PRNGKey(0)
    # Small NCHW input consistent with a conv-net feature map.
    x = jax.random.normal(key, (2, 4, 16, 16), dtype=jnp.float32)

    sigma = 0.1
    seed = 1234

    # Training mode: noise is added.
    y_train = jax.block_until_ready(noise_layer(x, seed, sigma=sigma, training=True))
    # Eval mode: identity.
    y_eval = jax.block_until_ready(noise_layer(x, seed, sigma=sigma, training=False))

    assert y_train.shape == x.shape and y_train.dtype == x.dtype
    assert bool(jnp.all(y_eval == x))

    # Pure-JAX reference using the same noise stream (same key / shape / dtype / order).
    noise_ref = (
        jax.random.normal(jax.random.PRNGKey(seed), (x.size,), dtype=x.dtype)
        * jnp.asarray(sigma, x.dtype)
    ).reshape(x.shape)
    expected = x + x * noise_ref
    assert bool(jnp.allclose(y_train, expected, rtol=1e-6, atol=1e-6))

    # Noise should actually perturb the tensor in training mode.
    assert bool(jnp.any(jnp.abs(y_train - x) > 0.0))

    print("KERNEL_OK")
</pallas_src>

<mosaic_0001>
module attributes {stable_mosaic.version = 11 : i64} {
  func.func @_noise_apply_kernel(%arg0: i32, %arg1: memref<4x512xf32, #tpu.memory_space<vmem>>, %arg2: memref<4x512xf32, #tpu.memory_space<vmem>>, %arg3: memref<4x512xf32, #tpu.memory_space<vmem>>) attributes {dimension_semantics = [#tpu.dimension_semantics<parallel>], iteration_bounds = array<i64: 1>, scalar_prefetch = 0 : i64, scratch_operands = 0 : i64, tpu.core_type = #tpu.core_type<tc>, window_params = [{transform_indices = @transform_0, window_bounds = array<i64: 4, 512>}, {transform_indices = @transform_1, window_bounds = array<i64: 4, 512>}, {transform_indices = @transform_2, window_bounds = array<i64: 4, 512>}]} {
    %c0 = arith.constant 0 : index
    %c0_0 = arith.constant 0 : index
    %0 = vector.load %arg1[%c0, %c0_0] : memref<4x512xf32, #tpu.memory_space<vmem>>, vector<4x512xf32>
    %c0_1 = arith.constant 0 : index
    %c0_2 = arith.constant 0 : index
    %1 = vector.load %arg2[%c0_1, %c0_2] : memref<4x512xf32, #tpu.memory_space<vmem>>, vector<4x512xf32>
    %2 = arith.mulf %0, %1 : vector<4x512xf32>
    %3 = arith.addf %0, %2 : vector<4x512xf32>
    %c0_3 = arith.constant 0 : index
    %c0_4 = arith.constant 0 : index
    %4 = vector.load %arg3[%c0_3, %c0_4] : memref<4x512xf32, #tpu.memory_space<vmem>>, vector<4x512xf32>
    tpu.vector_store %arg3[%c0_3, %c0_4], %3 {strides = array<i32>} : memref<4x512xf32, #tpu.memory_space<vmem>>, vector<4x512xf32>,
    return
  }
  func.func @transform_0(%arg0: i32) -> (i32, i32) {
    %c0_i32 = arith.constant 0 : i32
    %c0_i32_0 = arith.constant 0 : i32
    return %arg0, %c0_i32 : i32, i32
  }
  func.func @transform_1(%arg0: i32) -> (i32, i32) {
    %c0_i32 = arith.constant 0 : i32
    %c0_i32_0 = arith.constant 0 : i32
    return %arg0, %c0_i32 : i32, i32
  }
  func.func @transform_2(%arg0: i32) -> (i32, i32) {
    %c0_i32 = arith.constant 0 : i32
    %c0_i32_0 = arith.constant 0 : i32
    return %arg0, %c0_i32 : i32, i32
  }
}

</mosaic_0001>

<bundles_post_ra>
// kernel: tpu_custom_call.1
= control target key start
LH: loop header
LB: loop body
LE: loop exit
PB: predicated region body
PF: predicated region fallthrough
CT: control target
= control target key end

     0   :  { %7 = vsyncpa [#allocation3], 0  ;;  %s176_s0 = inlined_call_operand.hbm [shape: f32[4,512], index: 0, kind: input, shape index: {}]   ;;  %s177_s1 = inlined_call_operand.hbm [shape: f32[4,512], index: 1, kind: input, shape index: {}]   ;;  %s178_s2 = inlined_call_operand.hbm [shape: f32[4,512], index: 2, kind: output, shape index: {}]  }
   0x1   :  { %8 = vsyncpa [#allocation6], 0 }
   0x2   :  { %9 = vsyncpa [#allocation4], 0  ;;  %s15_s11 = sshll.u32 %s176_s0, 4  ;;  %s149_s12 = smov [#allocation2]   ;;  %s16_s11 = int_to_ptr.hbm [resolvable:$true] %s15_s11 }
   0x3   :  { %s17_s13 = sshll.u32 %s149_s12, 4  ;;  %s26_s16 = sshll.u32 %s177_s1, 4  ;;  %s18_s13 = int_to_ptr.vmem [resolvable:$true] %s17_s13  ;;  %s27_s16 = int_to_ptr.hbm [resolvable:$true] %s26_s16 }
   0x4   :  { %20 = dma.hbm_to_vmem [thread:$0]  %s16_s11, 256, %s18_s13, [#allocation3]  }
   0x5   :  { %s150_s17 = smov [#allocation5]  }
   0x6   :  { %s28_s18 = sshll.u32 %s150_s17, 4  ;;  %s29_s18 = int_to_ptr.vmem [resolvable:$true] %s28_s18 }
   0x7   :  { %31 = dma.hbm_to_vmem [thread:$0]  %s27_s16, 256, %s29_s18, [#allocation6]  }
   0x8   :  { %143 = dma.done.wait [#allocation3], 256  }
   0x9   :  { %144 = vsyncadd [#allocation3], 4294967040 }
   0xa   :  { %145 = dma.done.wait [#allocation6], 256  }
   0xb   :  { %146 = vsyncadd [#allocation6], 4294967040  ;;  %v40_v0 = vld [vmem:[#allocation2] sm:$0xff]  ;;  %v42_v1 = vld [vmem:[#allocation5] sm:$0xff]  ;;  %s151_s0 = smov [#allocation7]   ;;  %s57_s1 = sshll.u32 %s178_s2, 4  ;;  %s58_s1 = int_to_ptr.hbm [resolvable:$true] %s57_s1 }
   0xc   :  { %v41_v2 = vld [vmem:[#allocation2 + $0x8] sm:$0xff]  ;;  %v44_v3 = vmul.f32 %v42_v1, %v40_v0  ;;  %v43_v4 = vld [vmem:[#allocation5 + $0x8] sm:$0xff]  ;;  %s55_s19 = sshll.u32 %s151_s0, 4  ;;  %s56_s19 = int_to_ptr.vmem [resolvable:$true] %s55_s19 }
   0xd   :  { %v45_v5 = vmul.f32 %v43_v4, %v41_v2 }
   0xe   :  { %v46_v6 = vadd.f32 %v44_v3, %v40_v0 }
   0xf   :  { %v47_v7 = vadd.f32 %v45_v5, %v41_v2 }
  0x10   :  { %48 = vst [vmem:[#allocation7] sm:$0xff] %v46_v6 }
  0x11   :  { %49 = vst [vmem:[#allocation7 + $0x8] sm:$0xff] %v47_v7 }
  0x12   :  { %60 = dma.vmem_to_hbm [thread:$0]  %s56_s19, 256, %s58_s1, [#allocation4]  }
  0x13   :  { %147 = dma.done.wait [#allocation4], 256  }
  0x14   :  { %148 = vsyncadd [#allocation4], 4294967040 }
  0x15   :  { %65 = vsyncpa [#allocation3], 1 }
  0x16   :  { %66 = vsyncpa [#allocation6], 1 }
  0x17   :  { %67 = vsyncpa [#allocation4], 1 }

</bundles_post_ra>
